<compile_context>
chip_gen: v7x
topology: tpu7x:2x2x1
jax: 0.10.0
libtpu: 0.0.40
codegen_flags: <defaults>
</compile_context>

<pallas_src>
import jax
import jax.numpy as jnp
import numpy as np
from jax.experimental import pallas as pl
from jax.experimental.pallas import tpu as pltpu

# ---------------- configuration (small, consistent with the module) ----------
NUM_ENT = 256      # len(d.entities)
NUM_REL = 16       # len(d.relations)
D1 = 32            # entity embedding dim
D2 = 32            # relation embedding dim
IN_C = 1           # HypER forward requires in_channels == 1
OUT_C = 4
FILT_H = 1         # HypER forward requires filt_h == 1 (input height is 1)
FILT_W = 9
BATCH = 8
WP = D1 - FILT_W + 1                      # conv output width
FC_LEN = (1 - FILT_H + 1) * WP * OUT_C    # flattened feature-map length
FC1_LEN = IN_C * OUT_C * FILT_H * FILT_W  # hypernetwork output length
EPS = 1e-5


# ---------------- fused kernel ------------------------------------------------
def hyper_kernel(bn0_ref,                               # SMEM (2,) f32
                 e1_idx_ref, r_idx_ref,                 # VMEM (B,1) int32
                 E_ref, rfc1_ref, fcw_ref, fcb_ref, bias_ref,   # VMEM params
                 out_ref):                              # VMEM out (B, NUM_ENT)
    f32 = jnp.float32

    # ---- one-hot MXU gathers (no scalar-indexed loops, no scratch) ----------
    ent_iota = jax.lax.broadcasted_iota(jnp.int32, (BATCH, NUM_ENT), 1)
    oh_e = jnp.where(ent_iota == e1_idx_ref[...], 1.0, 0.0).astype(jnp.bfloat16)
    e1 = jnp.dot(oh_e, E_ref[...], preferred_element_type=f32)      # (B, D1)

    rel_iota = jax.lax.broadcasted_iota(jnp.int32, (BATCH, NUM_REL), 1)
    oh_r = jnp.where(rel_iota == r_idx_ref[...], 1.0, 0.0).astype(jnp.bfloat16)
    # per-example conv filters: fc1 bias already folded into the table.
    k = jnp.dot(oh_r, rfc1_ref[...], preferred_element_type=f32)    # (B, FC1_LEN)

    # ---- bn0 (eval) as two SMEM scalars; inp_drop = identity ----------------
    x = e1 * bn0_ref[0] + bn0_ref[1]                                # (B, D1)

    # ---- grouped conv (per-example 1-D correlation) + bn1-folded fc ---------
    # 9 shifted windows of x (hoisted, 1 vreg each), 36 FMAs, then 4 per-
    # channel (B, WP) @ (WP, D1) dots — no lane re-pack of the feature map.
    xw = [x[:, j:j + WP] for j in range(FILT_W)]                    # 9 x (B, WP)
    feat = None
    for o in range(OUT_C):
        base = o * FILT_W
        acc = xw[0] * k[:, base:base + 1]
        for j in range(1, FILT_W):
            acc = acc + xw[j] * k[:, base + j:base + j + 1]         # (B, WP) f32
        d = jnp.dot(acc.astype(jnp.bfloat16), fcw_ref[o],
                    preferred_element_type=f32)                     # (B, D1)
        feat = d if feat is None else feat + d
    # feature_map_drop / hidden_drop = identity (eval); relu:
    feat = jnp.maximum(feat + fcb_ref[...], 0.0)                    # (B, D1)

    # ---- logits = feat @ E^T + b  (single lane-dense (B, NUM_ENT) block) ----
    logits = jax.lax.dot_general(
        feat.astype(jnp.bfloat16), E_ref[...],
        dimension_numbers=(((1,), (1,)), ((), ())),
        preferred_element_type=f32)                                 # (B, NUM_ENT)
    out_ref[...] = logits + bias_ref[...]


# ---------------- one-time parameter preparation (NOT in the per-call path) ----
def prepare_params(P):
    # bn0 (eval) folded to scale/shift scalars.
    bn0_s = P["bn0_g"] / jnp.sqrt(P["bn0_v"] + EPS)                 # (1,)
    bn0_b = P["bn0_b"] - P["bn0_m"] * bn0_s                         # (1,)
    bn0 = jnp.concatenate([bn0_s, bn0_b]).astype(jnp.float32)       # (2,) SMEM

    # bn1 (eval) folded into the fc layer.
    bn1_s = P["bn1_g"] / jnp.sqrt(P["bn1_v"] + EPS)                 # (OUT_C,)
    bn1_b = P["bn1_b"] - P["bn1_m"] * bn1_s                         # (OUT_C,)

    # Hypernetwork folded per relation: row r = conv filters for relation r.
    rfc1 = P["R"] @ P["fc1_w"].T + P["fc1_b"][None, :]              # (NUM_REL, FC1_LEN)

    fcwT = P["fc_w"].T                                              # (FC_LEN, D1), row = o*WP+w
    fcw_eff = fcwT * jnp.repeat(bn1_s, WP)[:, None]                 # (FC_LEN, D1)
    fcb_eff = P["fc_b"] + jnp.repeat(bn1_b, WP) @ fcwT              # (D1,)
    fcw_split = fcw_eff.reshape(OUT_C, WP, D1)                      # per-channel blocks

    return {
        "bn0": bn0,
        "E": P["E"].astype(jnp.bfloat16),                           # (NUM_ENT, D1)
        "rfc1": rfc1.astype(jnp.bfloat16),                          # (NUM_REL, FC1_LEN)
        "fcw": fcw_split.astype(jnp.bfloat16),                      # (OUT_C, WP, D1)
        "fcb": fcb_eff[None, :].astype(jnp.float32),                # (1, D1)
        "b": P["b"][None, :].astype(jnp.float32),                   # (1, NUM_ENT)
    }


# ---------------- per-call wrapper (jit body is exactly one pallas_call) -------
def hyper_forward(e1_idx, r_idx, prepped):
    vmem = pl.BlockSpec(memory_space=pltpu.MemorySpace.VMEM)
    smem = pl.BlockSpec(memory_space=pltpu.MemorySpace.SMEM)
    return pl.pallas_call(
        hyper_kernel,
        out_shape=jax.ShapeDtypeStruct((BATCH, NUM_ENT), jnp.float32),
        in_specs=[smem,                     # bn0 scalars
                  vmem, vmem,               # e1_idx, r_idx  (B,1) int32
                  vmem, vmem, vmem, vmem, vmem],
        out_specs=vmem,
    )(prepped["bn0"], e1_idx, r_idx,
      prepped["E"], prepped["rfc1"], prepped["fcw"], prepped["fcb"],
      prepped["b"])


# ---------------- deterministic parameter construction -------------------------
def make_params():
    key = jax.random.PRNGKey(0)
    ks = jax.random.split(key, 12)

    def xavier(k, shape):
        std = float(np.sqrt(2.0 / (shape[0] + shape[1])))
        return (std * jax.random.normal(k, shape)).astype(jnp.float32)

    P = {
        "E": xavier(ks[0], (NUM_ENT, D1)),
        "R": xavier(ks[1], (NUM_REL, D2)),
        "fc1_w": xavier(ks[2], (FC1_LEN, D2)),
        "fc1_b": (0.01 * jax.random.normal(ks[3], (FC1_LEN,))).astype(jnp.float32),
        "fc_w": xavier(ks[4], (D1, FC_LEN)),
        "fc_b": (0.01 * jax.random.normal(ks[5], (D1,))).astype(jnp.float32),
        "b": jnp.zeros((NUM_ENT,), jnp.float32),
        # BatchNorm2d(in_channels=1), eval mode
        "bn0_g": (1.0 + 0.1 * jax.random.normal(ks[6], (IN_C,))).astype(jnp.float32),
        "bn0_b": (0.1 * jax.random.normal(ks[7], (IN_C,))).astype(jnp.float32),
        "bn0_m": (0.1 * jax.random.normal(ks[8], (IN_C,))).astype(jnp.float32),
        "bn0_v": (0.5 + 0.5 * jax.random.uniform(ks[9], (IN_C,))).astype(jnp.float32),
        # BatchNorm2d(out_channels), eval mode
        "bn1_g": (1.0 + 0.1 * jax.random.normal(ks[10], (OUT_C,))).astype(jnp.float32),
        "bn1_b": (0.1 * jax.random.normal(ks[11], (OUT_C,))).astype(jnp.float32),
        "bn1_m": jnp.linspace(-0.1, 0.1, OUT_C).astype(jnp.float32),
        "bn1_v": jnp.linspace(0.8, 1.2, OUT_C).astype(jnp.float32),
    }
    return P


# ---------------- numpy reference (mirrors the torch forward in eval mode) -----
def reference_forward(e1_idx, r_idx, P):
    g = lambda n: np.asarray(P[n], np.float64)
    E, R = g("E"), g("R")
    r = R[np.asarray(r_idx)]                                       # (B, D2)
    k = r @ g("fc1_w").T + g("fc1_b")                              # (B, FC1_LEN)
    k = k.reshape(BATCH, IN_C, OUT_C, FILT_H, FILT_W)
    e1 = E[np.asarray(e1_idx)].reshape(BATCH, 1, 1, D1)
    x = (e1 - g("bn0_m")) / np.sqrt(g("bn0_v") + EPS) * g("bn0_g") + g("bn0_b")
    conv = np.zeros((BATCH, OUT_C, WP))
    for b in range(BATCH):
        for o in range(OUT_C):
            for w in range(WP):
                conv[b, o, w] = np.sum(x[b, 0, 0, w:w + FILT_W] * k[b, 0, o, 0, :])
    conv = ((conv - g("bn1_m")[None, :, None])
            / np.sqrt(g("bn1_v") + EPS)[None, :, None]
            * g("bn1_g")[None, :, None] + g("bn1_b")[None, :, None])
    flat = conv.reshape(BATCH, -1)                                 # (B, OUT_C*WP)
    feat = np.maximum(flat @ g("fc_w").T + g("fc_b"), 0.0)
    return feat @ E.T + g("b")


# ---------------- main ----------------------------------------------------------
if __name__ == "__main__":
    P = make_params()
    prepped = prepare_params(P)              # one-time; off the per-call path
    prepped = jax.block_until_ready(prepped)

    key = jax.random.PRNGKey(0)
    k1, k2 = jax.random.split(key)
    e1_idx = jax.random.randint(k1, (BATCH, 1), 0, NUM_ENT, dtype=jnp.int32)
    r_idx = jax.random.randint(k2, (BATCH, 1), 0, NUM_REL, dtype=jnp.int32)

    fwd = jax.jit(hyper_forward)
    logits = fwd(e1_idx, r_idx, prepped)
    logits = jax.block_until_ready(logits)

    ref = reference_forward(np.asarray(e1_idx)[:, 0], np.asarray(r_idx)[:, 0], P)
    assert logits.shape == (BATCH, NUM_ENT)
    assert np.allclose(np.asarray(logits), ref, rtol=2e-3, atol=2e-3), (
        "mismatch vs reference")
    print("KERNEL_OK")
</pallas_src>

<mosaic_0001>
module attributes {stable_mosaic.version = 11 : i64} {
  func.func @hyper_kernel(%arg0: memref<2xf32, #tpu.memory_space<smem>>, %arg1: memref<8x1xi32, #tpu.memory_space<vmem>>, %arg2: memref<8x1xi32, #tpu.memory_space<vmem>>, %arg3: memref<256x32xbf16, #tpu.memory_space<vmem>>, %arg4: memref<16x36xbf16, #tpu.memory_space<vmem>>, %arg5: memref<4x24x32xbf16, #tpu.memory_space<vmem>>, %arg6: memref<1x32xf32, #tpu.memory_space<vmem>>, %arg7: memref<1x256xf32, #tpu.memory_space<vmem>>, %arg8: memref<8x256xf32, #tpu.memory_space<vmem>>) attributes {dimension_semantics = [], scalar_prefetch = 0 : i64, scratch_operands = 0 : i64, tpu.core_type = #tpu.core_type<tc>} {
    %0 = tpu.iota {dimensions = array<i32: 1>} : vector<8x256xi32>
    %c0 = arith.constant 0 : index
    %c0_0 = arith.constant 0 : index
    %1 = vector.load %arg1[%c0, %c0_0] : memref<8x1xi32, #tpu.memory_space<vmem>>, vector<8x1xi32>
    %2 = vector.broadcast %1 : vector<8x1xi32> to vector<8x256xi32>
    %3 = arith.cmpi eq, %0, %2 : vector<8x256xi32>
    %cst = arith.constant 1.000000e+00 : f32
    %cst_1 = arith.constant 0.000000e+00 : f32
    %4 = vector.broadcast %cst : f32 to vector<8x256xf32>
    %5 = vector.broadcast %cst_1 : f32 to vector<8x256xf32>
    %6 = arith.select %3, %4, %5 : vector<8x256xi1>, vector<8x256xf32>
    %7 = arith.truncf %6 : vector<8x256xf32> to vector<8x256xbf16>
    %c0_2 = arith.constant 0 : index
    %c0_3 = arith.constant 0 : index
    %8 = vector.load %arg3[%c0_2, %c0_3] : memref<256x32xbf16, #tpu.memory_space<vmem>>, vector<256x32xbf16>
    %cst_4 = arith.constant dense<0.000000e+00> : vector<8x32xf32>
    %9 = tpu.matmul %7, %8, %cst_4 {dimension_numbers = #tpu.dot_dimension_numbers<[1], [0], [0], [1], [0, 0, 1, 1], [], []>} : vector<8x256xbf16>, vector<256x32xbf16>, vector<8x32xf32> -> vector<8x32xf32>
    %10 = tpu.iota {dimensions = array<i32: 1>} : vector<8x16xi32>
    %c0_5 = arith.constant 0 : index
    %c0_6 = arith.constant 0 : index
    %11 = vector.load %arg2[%c0_5, %c0_6] : memref<8x1xi32, #tpu.memory_space<vmem>>, vector<8x1xi32>
    %12 = vector.broadcast %11 : vector<8x1xi32> to vector<8x16xi32>
    %13 = arith.cmpi eq, %10, %12 : vector<8x16xi32>
    %cst_7 = arith.constant 1.000000e+00 : f32
    %cst_8 = arith.constant 0.000000e+00 : f32
    %14 = vector.broadcast %cst_7 : f32 to vector<8x16xf32>
    %15 = vector.broadcast %cst_8 : f32 to vector<8x16xf32>
    %16 = arith.select %13, %14, %15 : vector<8x16xi1>, vector<8x16xf32>
    %17 = arith.truncf %16 : vector<8x16xf32> to vector<8x16xbf16>
    %c0_9 = arith.constant 0 : index
    %c0_10 = arith.constant 0 : index
    %18 = vector.load %arg4[%c0_9, %c0_10] : memref<16x36xbf16, #tpu.memory_space<vmem>>, vector<16x36xbf16>
    %cst_11 = arith.constant dense<0.000000e+00> : vector<8x36xf32>
    %19 = tpu.matmul %17, %18, %cst_11 {dimension_numbers = #tpu.dot_dimension_numbers<[1], [0], [0], [1], [0, 0, 1, 1], [], []>} : vector<8x16xbf16>, vector<16x36xbf16>, vector<8x36xf32> -> vector<8x36xf32>
    %c0_12 = arith.constant 0 : index
    %20 = memref.load %arg0[%c0_12] : memref<2xf32, #tpu.memory_space<smem>>
    %21 = vector.broadcast %20 : f32 to vector<8x32xf32>
    %22 = arith.mulf %9, %21 : vector<8x32xf32>
    %c1 = arith.constant 1 : index
    %23 = memref.load %arg0[%c1] : memref<2xf32, #tpu.memory_space<smem>>
    %24 = vector.broadcast %23 : f32 to vector<8x32xf32>
    %25 = arith.addf %22, %24 : vector<8x32xf32>
    %26 = vector.extract_strided_slice %25 {offsets = [0, 0], sizes = [8, 24], strides = [1, 1]} : vector<8x32xf32> to vector<8x24xf32>
    %27 = vector.extract_strided_slice %25 {offsets = [0, 1], sizes = [8, 24], strides = [1, 1]} : vector<8x32xf32> to vector<8x24xf32>
    %28 = vector.extract_strided_slice %25 {offsets = [0, 2], sizes = [8, 24], strides = [1, 1]} : vector<8x32xf32> to vector<8x24xf32>
    %29 = vector.extract_strided_slice %25 {offsets = [0, 3], sizes = [8, 24], strides = [1, 1]} : vector<8x32xf32> to vector<8x24xf32>
    %30 = vector.extract_strided_slice %25 {offsets = [0, 4], sizes = [8, 24], strides = [1, 1]} : vector<8x32xf32> to vector<8x24xf32>
    %31 = vector.extract_strided_slice %25 {offsets = [0, 5], sizes = [8, 24], strides = [1, 1]} : vector<8x32xf32> to vector<8x24xf32>
    %32 = vector.extract_strided_slice %25 {offsets = [0, 6], sizes = [8, 24], strides = [1, 1]} : vector<8x32xf32> to vector<8x24xf32>
    %33 = vector.extract_strided_slice %25 {offsets = [0, 7], sizes = [8, 24], strides = [1, 1]} : vector<8x32xf32> to vector<8x24xf32>
    %34 = vector.extract_strided_slice %25 {offsets = [0, 8], sizes = [8, 24], strides = [1, 1]} : vector<8x32xf32> to vector<8x24xf32>
    %35 = vector.extract_strided_slice %19 {offsets = [0, 0], sizes = [8, 1], strides = [1, 1]} : vector<8x36xf32> to vector<8x1xf32>
    %36 = vector.broadcast %35 : vector<8x1xf32> to vector<8x24xf32>
    %37 = arith.mulf %26, %36 : vector<8x24xf32>
    %38 = vector.extract_strided_slice %19 {offsets = [0, 1], sizes = [8, 1], strides = [1, 1]} : vector<8x36xf32> to vector<8x1xf32>
    %39 = vector.broadcast %38 : vector<8x1xf32> to vector<8x24xf32>
    %40 = arith.mulf %27, %39 : vector<8x24xf32>
    %41 = arith.addf %37, %40 : vector<8x24xf32>
    %42 = vector.extract_strided_slice %19 {offsets = [0, 2], sizes = [8, 1], strides = [1, 1]} : vector<8x36xf32> to vector<8x1xf32>
    %43 = vector.broadcast %42 : vector<8x1xf32> to vector<8x24xf32>
    %44 = arith.mulf %28, %43 : vector<8x24xf32>
    %45 = arith.addf %41, %44 : vector<8x24xf32>
    %46 = vector.extract_strided_slice %19 {offsets = [0, 3], sizes = [8, 1], strides = [1, 1]} : vector<8x36xf32> to vector<8x1xf32>
    %47 = vector.broadcast %46 : vector<8x1xf32> to vector<8x24xf32>
    %48 = arith.mulf %29, %47 : vector<8x24xf32>
    %49 = arith.addf %45, %48 : vector<8x24xf32>
    %50 = vector.extract_strided_slice %19 {offsets = [0, 4], sizes = [8, 1], strides = [1, 1]} : vector<8x36xf32> to vector<8x1xf32>
    %51 = vector.broadcast %50 : vector<8x1xf32> to vector<8x24xf32>
    %52 = arith.mulf %30, %51 : vector<8x24xf32>
    %53 = arith.addf %49, %52 : vector<8x24xf32>
    %54 = vector.extract_strided_slice %19 {offsets = [0, 5], sizes = [8, 1], strides = [1, 1]} : vector<8x36xf32> to vector<8x1xf32>
    %55 = vector.broadcast %54 : vector<8x1xf32> to vector<8x24xf32>
    %56 = arith.mulf %31, %55 : vector<8x24xf32>
    %57 = arith.addf %53, %56 : vector<8x24xf32>
    %58 = vector.extract_strided_slice %19 {offsets = [0, 6], sizes = [8, 1], strides = [1, 1]} : vector<8x36xf32> to vector<8x1xf32>
    %59 = vector.broadcast %58 : vector<8x1xf32> to vector<8x24xf32>
    %60 = arith.mulf %32, %59 : vector<8x24xf32>
    %61 = arith.addf %57, %60 : vector<8x24xf32>
    %62 = vector.extract_strided_slice %19 {offsets = [0, 7], sizes = [8, 1], strides = [1, 1]} : vector<8x36xf32> to vector<8x1xf32>
    %63 = vector.broadcast %62 : vector<8x1xf32> to vector<8x24xf32>
    %64 = arith.mulf %33, %63 : vector<8x24xf32>
    %65 = arith.addf %61, %64 : vector<8x24xf32>
    %66 = vector.extract_strided_slice %19 {offsets = [0, 8], sizes = [8, 1], strides = [1, 1]} : vector<8x36xf32> to vector<8x1xf32>
    %67 = vector.broadcast %66 : vector<8x1xf32> to vector<8x24xf32>
    %68 = arith.mulf %34, %67 : vector<8x24xf32>
    %69 = arith.addf %65, %68 : vector<8x24xf32>
    %70 = arith.truncf %69 : vector<8x24xf32> to vector<8x24xbf16>
    %c0_13 = arith.constant 0 : index
    %c0_14 = arith.constant 0 : index
    %c0_15 = arith.constant 0 : index
    %71 = vector.load %arg5[%c0_13, %c0_14, %c0_15] : memref<4x24x32xbf16, #tpu.memory_space<vmem>>, vector<1x24x32xbf16>
    %72 = vector.shape_cast %71 : vector<1x24x32xbf16> to vector<24x32xbf16>
    %cst_16 = arith.constant dense<0.000000e+00> : vector<8x32xf32>
    %73 = tpu.matmul %70, %72, %cst_16 {dimension_numbers = #tpu.dot_dimension_numbers<[1], [0], [0], [1], [0, 0, 1, 1], [], []>} : vector<8x24xbf16>, vector<24x32xbf16>, vector<8x32xf32> -> vector<8x32xf32>
    %74 = vector.extract_strided_slice %19 {offsets = [0, 9], sizes = [8, 1], strides = [1, 1]} : vector<8x36xf32> to vector<8x1xf32>
    %75 = vector.broadcast %74 : vector<8x1xf32> to vector<8x24xf32>
    %76 = arith.mulf %26, %75 : vector<8x24xf32>
    %77 = vector.extract_strided_slice %19 {offsets = [0, 10], sizes = [8, 1], strides = [1, 1]} : vector<8x36xf32> to vector<8x1xf32>
    %78 = vector.broadcast %77 : vector<8x1xf32> to vector<8x24xf32>
    %79 = arith.mulf %27, %78 : vector<8x24xf32>
    %80 = arith.addf %76, %79 : vector<8x24xf32>
    %81 = vector.extract_strided_slice %19 {offsets = [0, 11], sizes = [8, 1], strides = [1, 1]} : vector<8x36xf32> to vector<8x1xf32>
    %82 = vector.broadcast %81 : vector<8x1xf32> to vector<8x24xf32>
    %83 = arith.mulf %28, %82 : vector<8x24xf32>
    %84 = arith.addf %80, %83 : vector<8x24xf32>
    %85 = vector.extract_strided_slice %19 {offsets = [0, 12], sizes = [8, 1], strides = [1, 1]} : vector<8x36xf32> to vector<8x1xf32>
    %86 = vector.broadcast %85 : vector<8x1xf32> to vector<8x24xf32>
    %87 = arith.mulf %29, %86 : vector<8x24xf32>
    %88 = arith.addf %84, %87 : vector<8x24xf32>
    %89 = vector.extract_strided_slice %19 {offsets = [0, 13], sizes = [8, 1], strides = [1, 1]} : vector<8x36xf32> to vector<8x1xf32>
    %90 = vector.broadcast %89 : vector<8x1xf32> to vector<8x24xf32>
    %91 = arith.mulf %30, %90 : vector<8x24xf32>
    %92 = arith.addf %88, %91 : vector<8x24xf32>
    %93 = vector.extract_strided_slice %19 {offsets = [0, 14], sizes = [8, 1], strides = [1, 1]} : vector<8x36xf32> to vector<8x1xf32>
    %94 = vector.broadcast %93 : vector<8x1xf32> to vector<8x24xf32>
    %95 = arith.mulf %31, %94 : vector<8x24xf32>
    %96 = arith.addf %92, %95 : vector<8x24xf32>
    %97 = vector.extract_strided_slice %19 {offsets = [0, 15], sizes = [8, 1], strides = [1, 1]} : vector<8x36xf32> to vector<8x1xf32>
    %98 = vector.broadcast %97 : vector<8x1xf32> to vector<8x24xf32>
    %99 = arith.mulf %32, %98 : vector<8x24xf32>
    %100 = arith.addf %96, %99 : vector<8x24xf32>
    %101 = vector.extract_strided_slice %19 {offsets = [0, 16], sizes = [8, 1], strides = [1, 1]} : vector<8x36xf32> to vector<8x1xf32>
    %102 = vector.broadcast %101 : vector<8x1xf32> to vector<8x24xf32>
    %103 = arith.mulf %33, %102 : vector<8x24xf32>
    %104 = arith.addf %100, %103 : vector<8x24xf32>
    %105 = vector.extract_strided_slice %19 {offsets = [0, 17], sizes = [8, 1], strides = [1, 1]} : vector<8x36xf32> to vector<8x1xf32>
    %106 = vector.broadcast %105 : vector<8x1xf32> to vector<8x24xf32>
    %107 = arith.mulf %34, %106 : vector<8x24xf32>
    %108 = arith.addf %104, %107 : vector<8x24xf32>
    %109 = arith.truncf %108 : vector<8x24xf32> to vector<8x24xbf16>
    %c1_17 = arith.constant 1 : index
    %c0_18 = arith.constant 0 : index
    %c0_19 = arith.constant 0 : index
    %110 = vector.load %arg5[%c1_17, %c0_18, %c0_19] : memref<4x24x32xbf16, #tpu.memory_space<vmem>>, vector<1x24x32xbf16>
    %111 = vector.shape_cast %110 : vector<1x24x32xbf16> to vector<24x32xbf16>
    %cst_20 = arith.constant dense<0.000000e+00> : vector<8x32xf32>
    %112 = tpu.matmul %109, %111, %cst_20 {dimension_numbers = #tpu.dot_dimension_numbers<[1], [0], [0], [1], [0, 0, 1, 1], [], []>} : vector<8x24xbf16>, vector<24x32xbf16>, vector<8x32xf32> -> vector<8x32xf32>
    %113 = arith.addf %73, %112 : vector<8x32xf32>
    %114 = vector.extract_strided_slice %19 {offsets = [0, 18], sizes = [8, 1], strides = [1, 1]} : vector<8x36xf32> to vector<8x1xf32>
    %115 = vector.broadcast %114 : vector<8x1xf32> to vector<8x24xf32>
    %116 = arith.mulf %26, %115 : vector<8x24xf32>
    %117 = vector.extract_strided_slice %19 {offsets = [0, 19], sizes = [8, 1], strides = [1, 1]} : vector<8x36xf32> to vector<8x1xf32>
    %118 = vector.broadcast %117 : vector<8x1xf32> to vector<8x24xf32>
    %119 = arith.mulf %27, %118 : vector<8x24xf32>
    %120 = arith.addf %116, %119 : vector<8x24xf32>
    %121 = vector.extract_strided_slice %19 {offsets = [0, 20], sizes = [8, 1], strides = [1, 1]} : vector<8x36xf32> to vector<8x1xf32>
    %122 = vector.broadcast %121 : vector<8x1xf32> to vector<8x24xf32>
    %123 = arith.mulf %28, %122 : vector<8x24xf32>
    %124 = arith.addf %120, %123 : vector<8x24xf32>
    %125 = vector.extract_strided_slice %19 {offsets = [0, 21], sizes = [8, 1], strides = [1, 1]} : vector<8x36xf32> to vector<8x1xf32>
    %126 = vector.broadcast %125 : vector<8x1xf32> to vector<8x24xf32>
    %127 = arith.mulf %29, %126 : vector<8x24xf32>
    %128 = arith.addf %124, %127 : vector<8x24xf32>
    %129 = vector.extract_strided_slice %19 {offsets = [0, 22], sizes = [8, 1], strides = [1, 1]} : vector<8x36xf32> to vector<8x1xf32>
    %130 = vector.broadcast %129 : vector<8x1xf32> to vector<8x24xf32>
    %131 = arith.mulf %30, %130 : vector<8x24xf32>
    %132 = arith.addf %128, %131 : vector<8x24xf32>
    %133 = vector.extract_strided_slice %19 {offsets = [0, 23], sizes = [8, 1], strides = [1, 1]} : vector<8x36xf32> to vector<8x1xf32>
    %134 = vector.broadcast %133 : vector<8x1xf32> to vector<8x24xf32>
    %135 = arith.mulf %31, %134 : vector<8x24xf32>
    %136 = arith.addf %132, %135 : vector<8x24xf32>
    %137 = vector.extract_strided_slice %19 {offsets = [0, 24], sizes = [8, 1], strides = [1, 1]} : vector<8x36xf32> to vector<8x1xf32>
    %138 = vector.broadcast %137 : vector<8x1xf32> to vector<8x24xf32>
    %139 = arith.mulf %32, %138 : vector<8x24xf32>
    %140 = arith.addf %136, %139 : vector<8x24xf32>
    %141 = vector.extract_strided_slice %19 {offsets = [0, 25], sizes = [8, 1], strides = [1, 1]} : vector<8x36xf32> to vector<8x1xf32>
    %142 = vector.broadcast %141 : vector<8x1xf32> to vector<8x24xf32>
    %143 = arith.mulf %33, %142 : vector<8x24xf32>
    %144 = arith.addf %140, %143 : vector<8x24xf32>
    %145 = vector.extract_strided_slice %19 {offsets = [0, 26], sizes = [8, 1], strides = [1, 1]} : vector<8x36xf32> to vector<8x1xf32>
    %146 = vector.broadcast %145 : vector<8x1xf32> to vector<8x24xf32>
    %147 = arith.mulf %34, %146 : vector<8x24xf32>
    %148 = arith.addf %144, %147 : vector<8x24xf32>
    %149 = arith.truncf %148 : vector<8x24xf32> to vector<8x24xbf16>
    %c2 = arith.constant 2 : index
    %c0_21 = arith.constant 0 : index
    %c0_22 = arith.constant 0 : index
    %150 = vector.load %arg5[%c2, %c0_21, %c0_22] : memref<4x24x32xbf16, #tpu.memory_space<vmem>>, vector<1x24x32xbf16>
    %151 = vector.shape_cast %150 : vector<1x24x32xbf16> to vector<24x32xbf16>
    %cst_23 = arith.constant dense<0.000000e+00> : vector<8x32xf32>
    %152 = tpu.matmul %149, %151, %cst_23 {dimension_numbers = #tpu.dot_dimension_numbers<[1], [0], [0], [1], [0, 0, 1, 1], [], []>} : vector<8x24xbf16>, vector<24x32xbf16>, vector<8x32xf32> -> vector<8x32xf32>
    %153 = arith.addf %113, %152 : vector<8x32xf32>
    %154 = vector.extract_strided_slice %19 {offsets = [0, 27], sizes = [8, 1], strides = [1, 1]} : vector<8x36xf32> to vector<8x1xf32>
    %155 = vector.broadcast %154 : vector<8x1xf32> to vector<8x24xf32>
    %156 = arith.mulf %26, %155 : vector<8x24xf32>
    %157 = vector.extract_strided_slice %19 {offsets = [0, 28], sizes = [8, 1], strides = [1, 1]} : vector<8x36xf32> to vector<8x1xf32>
    %158 = vector.broadcast %157 : vector<8x1xf32> to vector<8x24xf32>
    %159 = arith.mulf %27, %158 : vector<8x24xf32>
    %160 = arith.addf %156, %159 : vector<8x24xf32>
    %161 = vector.extract_strided_slice %19 {offsets = [0, 29], sizes = [8, 1], strides = [1, 1]} : vector<8x36xf32> to vector<8x1xf32>
    %162 = vector.broadcast %161 : vector<8x1xf32> to vector<8x24xf32>
    %163 = arith.mulf %28, %162 : vector<8x24xf32>
    %164 = arith.addf %160, %163 : vector<8x24xf32>
    %165 = vector.extract_strided_slice %19 {offsets = [0, 30], sizes = [8, 1], strides = [1, 1]} : vector<8x36xf32> to vector<8x1xf32>
    %166 = vector.broadcast %165 : vector<8x1xf32> to vector<8x24xf32>
    %167 = arith.mulf %29, %166 : vector<8x24xf32>
    %168 = arith.addf %164, %167 : vector<8x24xf32>
    %169 = vector.extract_strided_slice %19 {offsets = [0, 31], sizes = [8, 1], strides = [1, 1]} : vector<8x36xf32> to vector<8x1xf32>
    %170 = vector.broadcast %169 : vector<8x1xf32> to vector<8x24xf32>
    %171 = arith.mulf %30, %170 : vector<8x24xf32>
    %172 = arith.addf %168, %171 : vector<8x24xf32>
    %173 = vector.extract_strided_slice %19 {offsets = [0, 32], sizes = [8, 1], strides = [1, 1]} : vector<8x36xf32> to vector<8x1xf32>
    %174 = vector.broadcast %173 : vector<8x1xf32> to vector<8x24xf32>
    %175 = arith.mulf %31, %174 : vector<8x24xf32>
    %176 = arith.addf %172, %175 : vector<8x24xf32>
    %177 = vector.extract_strided_slice %19 {offsets = [0, 33], sizes = [8, 1], strides = [1, 1]} : vector<8x36xf32> to vector<8x1xf32>
    %178 = vector.broadcast %177 : vector<8x1xf32> to vector<8x24xf32>
    %179 = arith.mulf %32, %178 : vector<8x24xf32>
    %180 = arith.addf %176, %179 : vector<8x24xf32>
    %181 = vector.extract_strided_slice %19 {offsets = [0, 34], sizes = [8, 1], strides = [1, 1]} : vector<8x36xf32> to vector<8x1xf32>
    %182 = vector.broadcast %181 : vector<8x1xf32> to vector<8x24xf32>
    %183 = arith.mulf %33, %182 : vector<8x24xf32>
    %184 = arith.addf %180, %183 : vector<8x24xf32>
    %185 = vector.extract_strided_slice %19 {offsets = [0, 35], sizes = [8, 1], strides = [1, 1]} : vector<8x36xf32> to vector<8x1xf32>
    %186 = vector.broadcast %185 : vector<8x1xf32> to vector<8x24xf32>
    %187 = arith.mulf %34, %186 : vector<8x24xf32>
    %188 = arith.addf %184, %187 : vector<8x24xf32>
    %189 = arith.truncf %188 : vector<8x24xf32> to vector<8x24xbf16>
    %c3 = arith.constant 3 : index
    %c0_24 = arith.constant 0 : index
    %c0_25 = arith.constant 0 : index
    %190 = vector.load %arg5[%c3, %c0_24, %c0_25] : memref<4x24x32xbf16, #tpu.memory_space<vmem>>, vector<1x24x32xbf16>
    %191 = vector.shape_cast %190 : vector<1x24x32xbf16> to vector<24x32xbf16>
    %cst_26 = arith.constant dense<0.000000e+00> : vector<8x32xf32>
    %192 = tpu.matmul %189, %191, %cst_26 {dimension_numbers = #tpu.dot_dimension_numbers<[1], [0], [0], [1], [0, 0, 1, 1], [], []>} : vector<8x24xbf16>, vector<24x32xbf16>, vector<8x32xf32> -> vector<8x32xf32>
    %193 = arith.addf %153, %192 : vector<8x32xf32>
    %c0_27 = arith.constant 0 : index
    %c0_28 = arith.constant 0 : index
    %194 = vector.load %arg6[%c0_27, %c0_28] : memref<1x32xf32, #tpu.memory_space<vmem>>, vector<1x32xf32>
    %195 = vector.broadcast %194 : vector<1x32xf32> to vector<8x32xf32>
    %196 = arith.addf %193, %195 : vector<8x32xf32>
    %cst_29 = arith.constant 0.000000e+00 : f32
    %197 = vector.broadcast %cst_29 : f32 to vector<8x32xf32>
    %198 = arith.maximumf %196, %197 : vector<8x32xf32>
    %199 = arith.truncf %198 : vector<8x32xf32> to vector<8x32xbf16>
    %c0_30 = arith.constant 0 : index
    %c0_31 = arith.constant 0 : index
    %200 = vector.load %arg3[%c0_30, %c0_31] : memref<256x32xbf16, #tpu.memory_space<vmem>>, vector<256x32xbf16>
    %cst_32 = arith.constant dense<0.000000e+00> : vector<8x256xf32>
    %201 = tpu.matmul %199, %200, %cst_32 {dimension_numbers = #tpu.dot_dimension_numbers<[1], [1], [0], [0], [0, 0, 1, 0], [], []>} : vector<8x32xbf16>, vector<256x32xbf16>, vector<8x256xf32> -> vector<8x256xf32>
    %c0_33 = arith.constant 0 : index
    %c0_34 = arith.constant 0 : index
    %202 = vector.load %arg7[%c0_33, %c0_34] : memref<1x256xf32, #tpu.memory_space<vmem>>, vector<1x256xf32>
    %203 = vector.broadcast %202 : vector<1x256xf32> to vector<8x256xf32>
    %204 = arith.addf %201, %203 : vector<8x256xf32>
    %c0_35 = arith.constant 0 : index
    %c0_36 = arith.constant 0 : index
    %205 = vector.load %arg8[%c0_35, %c0_36] : memref<8x256xf32, #tpu.memory_space<vmem>>, vector<8x256xf32>
    tpu.vector_store %arg8[%c0_35, %c0_36], %204 {strides = array<i32>} : memref<8x256xf32, #tpu.memory_space<vmem>>, vector<8x256xf32>,
    return
  }
}

</mosaic_0001>

<bundles_post_ra>
// kernel: hyper_forward.1
= control target key start
LH: loop header
LB: loop body
LE: loop exit
PB: predicated region body
PF: predicated region fallthrough
CT: control target
= control target key end

     0   :  { %13 = vsyncpa [#allocation4], 0  ;;  %s1726_s0 = inlined_call_operand.vmem [shape: f32[2], index: 0, kind: input, shape index: {}]   ;;  %s1727_s1 = inlined_call_operand.vmem [shape: s32[8,1], index: 1, kind: input, shape index: {}]   ;;  %s1728_s2 = inlined_call_operand.vmem [shape: s32[8,1], index: 2, kind: input, shape index: {}]   ;;  %s1729_s3 = inlined_call_operand.vmem [shape: bf16[256,32], index: 3, kind: input, shape index: {}]   ;;  %s1730_s4 = inlined_call_operand.vmem [shape: bf16[16,36], index: 4, kind: input, shape index: {}]   ;;  %s1731_s5 = inlined_call_operand.vmem [shape: bf16[4,24,32], index: 5, kind: input, shape index: {}]   ;;  %s1732_s6 = inlined_call_operand.vmem [shape: f32[1,32], index: 6, kind: input, shape index: {}]   ;;  %s1733_s7 = inlined_call_operand.vmem [shape: f32[1,256], index: 7, kind: input, shape index: {}]   ;;  %s1734_s8 = inlined_call_operand.hbm [shape: f32[8,256], index: 8, kind: output, shape index: {}]  }
   0x1   :  { %14 = vsyncpa [#allocation3], 0  ;;  %s21_s29 = sshll.u32 %s1726_s0, 4  ;;  %s22_s29 = int_to_ptr.vmem [resolvable:$true] %s21_s29 }
   0x2   :  { %s1264_s30 = scalar_lea.vmem %s22_s29, 16  ;;  %p1269_p1 = scmp.lt.s32.totalorder %s22_s29, %s22_s29 }
   0x3   :  { %p1265_p0 = scmp.ne.s32.totalorder %s22_s29, %s1264_s30  ;;  %p1270_p2 = scmp.lt.s32.totalorder %s1264_s30, %s1264_s30 }
   0x5   :  { %p1271_p3 = por %p1270_p2, %p1269_p1 }
   0x7   :  { %p1272_p4 = pnand %p1271_p3, %p1265_p0 }
   0x9   :  { %1275 = shalt.err (!%p1272_p4)
}
   0xa   :  { %s1302_s9 = smov [#allocation2]  }
   0xb   :  { %24 = dma.vmem_to_smem %s22_s29, 16, %s1302_s9, [#allocation4]  }
   0xc   :  { %1298 = dma.done.wait [#allocation4], 16  }
   0xd   :  { %1299 = vsyncadd [#allocation4], 4294967280 }
   0xe   :  { %42 = sfence }
   0xf   :  { %v225_v0 = vld [vmem:[%s1728_s2] sm:$0xff]  ;;  %v1303_v1 = vmov 0   ;;  %v1304_v4 = vmov 0.0   ;;  %v1421_v6 = vld [vmem:[%s1729_s3 + $0x48] sm:$0xff]   ;;  %v1433_v8 = vld [vmem:[%s1729_s3 + $0x50] sm:$0xff]   ;;  %vm1305_vm0 = vmmov 0   ;;  %v44_v23 = vlaneseq }
  0x10   :  { %1201 = vset.pattern.permute.xlu0 %v1303_v1  ;;  %v47_v2 = vld [vmem:[%s1727_s1] sm:$0xff]  ;;  %1106 = vmatprep.subr.bf16.mxu0 %v1304_v4  ;;  %v1427_v7 = vld [vmem:[%s1729_s3 + $0x8] sm:$0xff]   ;;  %v1441_v9 = vld [vmem:[%s1729_s3 + $0x10] sm:$0xff]   ;;  %v1306_v11 = vmov 10   ;;  %v1307_v13 = vmov 12   ;;  %vm240_vm2 = vcmask 130048  }
  0x11   :  { %v1409_v3 = vld [vmem:[%s1729_s3 + $0x40] sm:$0xff]   ;;  %227 = vperm.xlu0 %1201, %v225_v0   ;;  %1108 = vmatprep.mubr.msk.bf16.mxu0 %vm1305_vm0, %v1304_v4  ;;  %v1447_v10 = vld [vmem:[%s1729_s3 + $0x58] sm:$0xff]   ;;  %v1474_v17 = vld [vmem:[%s1729_s3 + $0x68] sm:$0xff]   ;;  %v45_v24 = vand.u32 127, %v44_v23  ;;  %v1308_v30 = vmov 1.0|1.0  }
  0x12   :  { %v1415_v5 = vld [vmem:[%s1729_s3] sm:$0xff]   ;;  %1052 = vmatprep.subr.bf16.mxu1 %v1409_v3  ;;  %1202 = vset.pattern.permute.xlu1 %v1306_v11  ;;  %v1453_v12 = vld [vmem:[%s1729_s3 + $0x18] sm:$0xff]   ;;  %v1479_v18 = vld [vmem:[%s1729_s3 + $0x28] sm:$0xff]   ;;  %v1309_v37 = vmov 14   ;;  %v1310_v38 = vmov 11   ;;  %v1311_v42 = vmov 3  }
  0x13   :  { %1053 = vmatpush3.bf16.msra.mxu1 %v1415_v5  ;;  %v1459_v14 = vld [vmem:[%s1729_s3 + $0x60] sm:$0xff]   ;;  %v1484_v19 = vld [vmem:[%s1729_s3 + $0x70] sm:$0xff]   ;;  %v1498_v21 = vld [vmem:[%s1729_s3 + $0x78] sm:$0xff]   ;;  %v46_v26 = vadd.s32 128, %v45_v24  ;;  %v1312_v43 = vmov 13   ;;  %v1313_v44 = vmov 17  }
  0x14   :  { %1054 = vmatprep.subr.bf16.mxu1 %v1421_v6  ;;  %v1253_v15 = vld [vmem:[%s1730_s4] sm:$0xff]   ;;  %v1492_v20 = vld [vmem:[%s1729_s3 + $0x30] sm:$0xff]   ;;  %v1504_v22 = vld [vmem:[%s1729_s3 + $0x38] sm:$0xff]   ;;  %v1314_v45 = vmov 1   ;;  %v1315_v46 = vmov 6   ;;  %v1316_v47 = vmov 2  }
  0x15   :  { %49 = vperm.xlu0 %1201, %v47_v2   ;;  %v1468_v16 = vld [vmem:[%s1729_s3 + $0x20] sm:$0xff]   ;;  %1107 = vmatpush3.bf16.msra.mxu0 %v1253_v15  ;;  %v1317_v48 = vmov 21   ;;  %v1318_v49 = vmov 15   ;;  %v1319_v50 = vmov 23   ;;  %v1320_v51 = vmov 16   ;;  %s284_s3 = sld [smem:[#allocation2]] }
  0x16   :  { %v1321_v52 = vmov 29   ;;  %v1322_v53 = vmov 4   ;;  %v1323_v54 = vmov 26   ;;  %v1324_v55 = vmov 5   ;;  %s1028_s19 = sld [smem:[#allocation2 + $0x1]]  ;;  %s1342_s20 = smov 127  }
  0x17   :  { %1055 = vmatpush3.bf16.msra.mxu1 %v1427_v7  ;;  %v1325_v56 = vmov 33   ;;  %v1326_v57 = vmov 19   ;;  %v1327_v58 = vmov 9   ;;  %v1328_v59 = vmov 20   ;;  %s1343_s21 = smov 125   ;;  %s1344_s22 = smov 126  }
  0x18   :  { %1056 = vmatprep.subr.bf16.mxu1 %v1433_v8  ;;  %v1329_v60 = vmov 27   ;;  %v1330_v61 = vmov 7   ;;  %v1331_v62 = vmov 8   ;;  %v1332_v63 = vmov 35   ;;  %s1345_s23 = smov 123   ;;  %s1346_s24 = smov 124  }
  0x19   :  { %1204 = vset.pattern.permute.xlu0 %v1307_v13  ;;  %v1333_v0 = vmov 22   ;;  %v1334_v2 = vmov 28   ;;  %v1335_v11 = vmov 24   ;;  %v1336_v13 = vmov 25   ;;  %s1347_s29 = smov 122   ;;  %s1348_s30 = smov 121  }
  0x1a   :  { %v1337_v15 = vmov 30   ;;  %vm483_vm7 = vcmask 1043456   ;;  %s1349_s9 = smov 120   ;;  %vm479_vm8 = vcmask 195584   ;;  %vm896_vm9 = vcmask 261120  }
  0x1b   :  { %1057 = vmatpush3.bf16.msra.mxu1 %v1441_v9  ;;  %1144 = vmatprep.subr.msk.bf16.mxu0 %vm896_vm9, %v1409_v3  ;;  %v910_v3 = vsel %vm896_vm9, %v1453_v12, 0 }
  0x1c   :  { %1058 = vmatprep.subr.bf16.mxu1 %v1447_v10 }
  0x1f   :  { %1059 = vmatpush3.bf16.msra.mxu1 %v1453_v12 }
  0x20   :  { %1060 = vmatprep.subr.bf16.mxu1 %v1459_v14 }
  0x23   :  { %1061 = vmatpush3.bf16.msra.mxu1 %v1468_v16 }
  0x24   :  { %1062 = vmatprep.subr.bf16.mxu1 %v1474_v17 }
  0x27   :  { %1063 = vmatpush3.bf16.msra.mxu1 %v1479_v18 }
  0x28   :  { %1064 = vmatprep.subr.bf16.mxu1 %v1484_v19 }
  0x2b   :  { %1065 = vmatpush3.bf16.msra.mxu1 %v1492_v20 }
  0x2c   :  { %1066 = vmatprep.subr.bf16.mxu1 %v1498_v21 }
  0x2f   :  { %1067 = vmatpush3.bf16.msra.mxu1 %v1504_v22 }
  0x30   :  { %1112 = vmatprep.subr.bf16.mxu1 %v1304_v4 }
  0x90   :  { %v228_v25 = vpop.permute.xlu0 %227 }
  0x91   :  { %vm229_vm1 = vcmp.eq.s32.totalorder %v45_v24, %v228_v25  ;;  %v1339_v25 = vmov 32  }
  0x92   :  { %v230_v27 = vsel %vm229_vm1, 1.0, %v1304_v4 }
  0x93   :  { %v231_v28 = vpack.c.bf16 %v230_v27, %v230_v27  ;;  %v1341_v27 = vmov 18  }
  0x94   :  { %v50_v29 = vpop.permute.xlu0 %49 }
  0x95   :  { %vm51_vm3 = vcmp.eq.s32.totalorder %v45_v24, %v50_v29  ;;  %1109 = vmatmul.mubr.msk.bf16.vlgmr.msra.gmra.mrb[0].mxu0 %vm240_vm2, %v231_v28  ;;  %vm52_vm4 = vcmp.eq.s32.totalorder %v46_v26, %v50_v29  ;;  %v1338_v24 = vmov 31   ;;  %v1340_v26 = vmov 34  }
  0x96   :  { %vm1024_vm5 = vmpackc.low %vm51_vm3, %vm51_vm3  ;;  %v285_v28 = vstv %s284_s3 }
  0x97   :  { %vm1022_vm6 = vmpackc.low %vm52_vm4, %vm52_vm4 }
  0x98   :  { %1023 = vmatprep.mubr.msk.bf16.mxu1 %vm1022_vm6, %v1308_v30 }
  0x99   :  { %1025 = vmatmul.mubr.msk.bf16.vlgmr.msra.gmra.mrb[0].mxu1 %vm1024_vm5, %v1308_v30  ;;  %v288_v30 = vstv %s1028_s19 }
  0x9a   :  { %1116 = vmatprep.mubr.msk.bf16.mxu1 %vm1305_vm0, %v1304_v4 }
 0x168   :  { %v1513_v31 = vpop.f32.mrb[0].mxu0 }
 0x169   :  { %406 = vperm.xlu0 %1204, %v1513_v31   ;;  %386 = vperm.xlu1 %1202, %v1513_v31   ;;  %v1110_v32 = vpop.f32.mrb[1].mxu0 }
 0x16a   :  { %v281_v33 = vpop.f32.mrb[2].mxu0 }
 0x16b   :  { %v1111_v34 = vpop.f32.mrb[3].mxu0 }
 0x16c   :  { %v1068_v35 = vpop.f32.mrb[0].mxu1 }
 0x16d   :  { %v1069_v36 = vpop.f32.mrb[1].mxu1  ;;  %1207 = vset.pattern.permute.xlu0 %v1309_v37  ;;  %1203 = vset.pattern.permute.xlu1 %v1310_v38 }
 0x16e   :  { %v1517_v39 = vadd.f32 %v1069_v36, %v1068_v35  ;;  %v1071_v40 = vpop.f32.mrb[2].mxu1  ;;  %426 = vperm.xlu0 %1207, %v1513_v31   ;;  %396 = vperm.xlu1 %1203, %v1513_v31  }
 0x16f   :  { %v1072_v41 = vpop.f32.mrb[3].mxu1 }
 0x170   :  { %v286_v29 = vmul.f32 %v1517_v39, %v285_v28 }
 0x172   :  { %1210 = vset.pattern.permute.xlu0 %v1311_v42  ;;  %1205 = vset.pattern.permute.xlu1 %v1312_v43  ;;  %v1555_v32 = vadd.f32 %v288_v30, %v286_v29 }
 0x173   :  { %317 = vperm.xlu0 %1210, %v1513_v31   ;;  %416 = vperm.xlu1 %1205, %v1513_v31  }
 0x177   :  { %1213 = vset.pattern.permute.xlu0 %v1313_v44  ;;  %1206 = vset.pattern.permute.xlu1 %v1314_v45  ;;  %v1256_v44 = vld [vmem:[%s1731_s5 + $0xc] sm:$0xff]  }
 0x178   :  { %456 = vperm.xlu0 %1213, %v1513_v31   ;;  %297 = vperm.xlu1 %1206, %v1513_v31  }
 0x179   :  { %1113 = vmatpush3.bf16.msra.mxu1 %v1256_v44 }
 0x17a   :  { %1114 = vmatprep.subr.bf16.mxu1 %v1304_v4 }
 0x17c   :  { %1216 = vset.pattern.permute.xlu0 %v1315_v46  ;;  %1208 = vset.pattern.permute.xlu1 %v1316_v47  ;;  %v1257_v47 = vld [vmem:[%s1731_s5 + $0x14] ss:$0 sps:$4 sm:$0xff]  }
 0x17d   :  { %347 = vperm.xlu0 %1216, %v1513_v31   ;;  %307 = vperm.xlu1 %1208, %v1513_v31  }
 0x181   :  { %1219 = vset.pattern.permute.xlu0 %v1317_v48  ;;  %1209 = vset.pattern.permute.xlu1 %v1318_v49 }
 0x182   :  { %608 = vperm.xlu0 %1219, %v1513_v31   ;;  %436 = vperm.xlu1 %1209, %v1513_v31  }
 0x186   :  { %1222 = vset.pattern.permute.xlu0 %v1319_v50  ;;  %1211 = vset.pattern.permute.xlu1 %v1320_v51  ;;  %v485_v50 = vsel %vm483_vm7, %v1257_v47, 0 }
 0x187   :  { %628 = vperm.xlu0 %1222, %v1513_v31   ;;  %446 = vperm.xlu1 %1211, %v1513_v31  }
 0x188   :  { %1115 = vmatpush3.bf16.msra.mxu1 %v485_v50 }
 0x189   :  { %1120 = vmatprep.subr.bf16.mxu1 %v1304_v4 }
 0x18b   :  { %1225 = vset.pattern.permute.xlu0 %v1321_v52  ;;  %1212 = vset.pattern.permute.xlu1 %v1322_v53 }
 0x18c   :  { %744 = vperm.xlu0 %1225, %v1513_v31   ;;  %327 = vperm.xlu1 %1212, %v1513_v31  }
 0x190   :  { %1228 = vset.pattern.permute.xlu0 %v1323_v54  ;;  %1214 = vset.pattern.permute.xlu1 %v1324_v55 }
 0x191   :  { %658 = vperm.xlu0 %1228, %v1513_v31   ;;  %337 = vperm.xlu1 %1214, %v1513_v31  }
 0x195   :  { %1231 = vset.pattern.permute.xlu0 %v1325_v56  ;;  %1215 = vset.pattern.permute.xlu1 %v1326_v57 }
 0x196   :  { %784 = vperm.xlu0 %1231, %v1513_v31   ;;  %588 = vperm.xlu1 %1215, %v1513_v31  }
 0x19a   :  { %1234 = vset.pattern.permute.xlu0 %v1327_v58  ;;  %1217 = vset.pattern.permute.xlu1 %v1328_v59 }
 0x19b   :  { %381 = vperm.xlu0 %1234, %v1513_v31   ;;  %598 = vperm.xlu1 %1217, %v1513_v31  }
 0x19f   :  { %1237 = vset.pattern.permute.xlu0 %v1329_v60  ;;  %1218 = vset.pattern.permute.xlu1 %v1330_v61 }
 0x1a0   :  { %729 = vperm.xlu0 %1237, %v1513_v31   ;;  %357 = vperm.xlu1 %1218, %v1513_v31  }
 0x1a4   :  { %1220 = vset.pattern.permute.xlu1 %v1331_v62  ;;  %1238 = vset.pattern.permute.xlu0 %v1332_v63 }
 0x1a5   :  { %367 = vperm.xlu1 %1220, %v1513_v31  }
 0x1a9   :  { %1221 = vset.pattern.permute.xlu1 %v1333_v0 }
 0x1aa   :  { %618 = vperm.xlu1 %1221, %v1513_v31  }
 0x1ae   :  { %1223 = vset.pattern.permute.xlu1 %v1334_v2 }
 0x1af   :  { %734 = vperm.xlu1 %1223, %v1513_v31  }
 0x1b3   :  { %1224 = vset.pattern.permute.xlu1 %v1335_v11 }
 0x1b4   :  { %638 = vperm.xlu1 %1224, %v1513_v31  }
 0x1b8   :  { %1226 = vset.pattern.permute.xlu1 %v1336_v13 }
 0x1b9   :  { %648 = vperm.xlu1 %1226, %v1513_v31  }
 0x1bd   :  { %1227 = vset.pattern.permute.xlu1 %v1337_v15 }
 0x1be   :  { %754 = vperm.xlu1 %1227, %v1513_v31  }
 0x1c2   :  { %1229 = vset.pattern.permute.xlu1 %v1338_v24 }
 0x1c3   :  { %764 = vperm.xlu1 %1229, %v1513_v31  }
 0x1c7   :  { %1230 = vset.pattern.permute.xlu1 %v1339_v25 }
 0x1c8   :  { %774 = vperm.xlu1 %1230, %v1513_v31  }
 0x1cc   :  { %1232 = vset.pattern.permute.xlu1 %v1340_v26 }
 0x1cd   :  { %794 = vperm.xlu1 %1232, %v1513_v31  }
 0x1d1   :  { %1233 = vset.pattern.permute.xlu1 %v1332_v63 }
 0x1d2   :  { %804 = vperm.xlu1 %1233, %v1513_v31  }
 0x1d6   :  { %1235 = vset.pattern.permute.xlu1 %v1303_v1 }
 0x1d7   :  { %292 = vperm.xlu1 %1235, %v1513_v31  }
 0x1db   :  { %1236 = vset.pattern.permute.xlu1 %v1341_v27 }
 0x1dc   :  { %583 = vperm.xlu1 %1236, %v1513_v31  }
 0x1e8   :  { %v407_v33 = vpop.permute.xlu0 %406  ;;  %v387_v34 = vpop.permute.xlu1 %386 }
 0x1e9   :  { %v389_v35 = vmul.f32 %v387_v34, %v1555_v32  ;;  %v409_v1 = vmul.f32 %v407_v33, %v1555_v32 }
 0x1eb   :  { %391 = vrot.lane.b32.xlu1 %v389_v35, %s1342_s20 }
 0x1ed   :  { %v397_v36 = vpop.permute.xlu1 %396  ;;  %v427_v37 = vpop.permute.xlu0 %426 }
 0x1ee   :  { %v399_v38 = vmul.f32 %v397_v36, %v1555_v32  ;;  %v429_v31 = vmul.f32 %v427_v37, %v1555_v32 }
 0x1ef   :  { %411 = vrot.lane.b32.xlu1 %v409_v1, %s1343_s21 }
 0x1f0   :  { %401 = vrot.lane.b32.xlu0 %v399_v38, %s1344_s22 }
 0x1f2   :  { %v417_v39 = vpop.permute.xlu1 %416  ;;  %v318_v46 = vpop.permute.xlu0 %317 }
 0x1f3   :  { %v419_v40 = vmul.f32 %v417_v39, %v1555_v32  ;;  %431 = vrot.lane.b32.xlu1 %v429_v31, %s1345_s23  ;;  %v320_v48 = vmul.f32 %v318_v46, %v1555_v32 }
 0x1f5   :  { %421 = vrot.lane.b32.xlu0 %v419_v40, %s1346_s24 }
 0x1f7   :  { %v298_v41 = vpop.permute.xlu1 %297  ;;  %v457_v53 = vpop.permute.xlu0 %456 }
 0x1f8   :  { %v300_v42 = vmul.f32 %v298_v41, %v1555_v32  ;;  %v459_v55 = vmul.f32 %v457_v53, %v1555_v32 }
 0x1fa   :  { %302 = vrot.lane.b32.xlu0 %v300_v42, %s1342_s20 }
 0x1fc   :  { %v308_v43 = vpop.permute.xlu1 %307  ;;  %v348_v58 = vpop.permute.xlu0 %347 }
 0x1fd   :  { %v310_v45 = vmul.f32 %v308_v43, %v1555_v32  ;;  %v350_v59 = vmul.f32 %v348_v58, %v1555_v32 }
 0x1ff   :  { %312 = vrot.lane.b32.xlu0 %v310_v45, %s1344_s22 }
 0x201   :  { %v437_v49 = vpop.permute.xlu1 %436  ;;  %v609_v11 = vpop.permute.xlu0 %608 }
 0x202   :  { %v439_v51 = vmul.f32 %v437_v49, %v1555_v32  ;;  %v611_v13 = vmul.f32 %v609_v11, %v1555_v32 }
 0x203   :  { %322 = vrot.lane.b32.xlu0 %v320_v48, %s1343_s21 }
 0x204   :  { %441 = vrot.lane.b32.xlu1 %v439_v51, %s1347_s29 }
 0x206   :  { %v447_v52 = vpop.permute.xlu1 %446  ;;  %v629_v27 = vpop.permute.xlu0 %628 }
 0x207   :  { %v449_v54 = vmul.f32 %v447_v52, %v1555_v32  ;;  %v631_v28 = vmul.f32 %v629_v27, %v1555_v32 }
 0x209   :  { %451 = vrot.lane.b32.xlu1 %v449_v54, %s1348_s30 }
 0x20b   :  { %v328_v56 = vpop.permute.xlu1 %327  ;;  %v745_v35 = vpop.permute.xlu0 %744 }
 0x20c   :  { %v330_v57 = vmul.f32 %v328_v56, %v1555_v32  ;;  %v747_v1 = vmul.f32 %v745_v35, %v1555_v32  ;;  %v1259_v35 = vld [vmem:[%s1731_s5 + $0x8] ss:$0 sps:$4 sm:$0xff]  }
 0x20d   :  { %461 = vrot.lane.b32.xlu1 %v459_v55, %s1349_s9 }
 0x20e   :  { %332 = vrot.lane.b32.xlu0 %v330_v57, %s1346_s24 }
 0x210   :  { %v338_v60 = vpop.permute.xlu1 %337  ;;  %v659_v39 = vpop.permute.xlu0 %658 }
 0x211   :  { %v340_v61 = vmul.f32 %v338_v60, %v1555_v32  ;;  %v661_v40 = vmul.f32 %v659_v39, %v1555_v32 }
 0x212   :  { %352 = vrot.lane.b32.xlu0 %v350_v59, %s1347_s29 }
 0x213   :  { %342 = vrot.lane.b32.xlu1 %v340_v61, %s1345_s23 }
 0x215   :  { %v589_v62 = vpop.permute.xlu1 %588  ;;  %v785_v45 = vpop.permute.xlu0 %784 }
 0x216   :  { %v591_v63 = vmul.f32 %v589_v62, %v1555_v32  ;;  %v787_v46 = vmul.f32 %v785_v45, %v1555_v32 }
 0x218   :  { %593 = vrot.lane.b32.xlu1 %v591_v63, %s1342_s20 }
 0x21a   :  { %v599_v0 = vpop.permute.xlu1 %598  ;;  %v382_v55 = vpop.permute.xlu0 %381 }
 0x21b   :  { %v601_v2 = vmul.f32 %v599_v0, %v1555_v32  ;;  %v384_v58 = vmul.f32 %v382_v55, %v1555_v32  ;;  %v1261_v55 = vld [vmem:[%s1731_s5 + $0x20] ss:$0 sps:$4 sm:$0xff]  }
 0x21d   :  { %603 = vrot.lane.b32.xlu1 %v601_v2, %s1344_s22 }
 0x21f   :  { %v358_v15 = vpop.permute.xlu1 %357  ;;  %v1630_v57 = vpop.permute.xlu0 %729 }
 0x220   :  { %v360_v24 = vmul.f32 %v358_v15, %v1555_v32 }
 0x221   :  { %613 = vrot.lane.b32.xlu1 %v611_v13, %s1343_s21 }
 0x222   :  { %362 = vrot.lane.b32.xlu0 %v360_v24, %s1348_s30 }
 0x224   :  { %v368_v25 = vpop.permute.xlu1 %367 }
 0x225   :  { %v370_v26 = vmul.f32 %v368_v25, %v1555_v32 }
 0x227   :  { %372 = vrot.lane.b32.xlu0 %v370_v26, %s1349_s9 }
 0x229   :  { %v619_v29 = vpop.permute.xlu1 %618 }
 0x22a   :  { %v621_v30 = vmul.f32 %v619_v29, %v1555_v32 }
 0x22b   :  { %633 = vrot.lane.b32.xlu0 %v631_v28, %s1345_s23 }
 0x22c   :  { %623 = vrot.lane.b32.xlu1 %v621_v30, %s1346_s24 }
 0x22e   :  { %v735_v33 = vpop.permute.xlu1 %734 }
 0x22f   :  { %v737_v34 = vmul.f32 %v735_v33, %v1555_v32  ;;  %v1258_v33 = vld [vmem:[%s1731_s5] sm:$0xff]  }
 0x231   :  { %739 = vrot.lane.b32.xlu1 %v737_v34, %s1342_s20 }
 0x233   :  { %v639_v36 = vpop.permute.xlu1 %638 }
 0x234   :  { %v641_v37 = vmul.f32 %v639_v36, %v1555_v32  ;;  %v540_v36 = vsel %vm483_vm7, %v1259_v35, 0  ;;  %v1263_v35 = vld [vmem:[%s1731_s5 + $0x2c] ss:$0 sps:$4 sm:$0xff]  }
 0x235   :  { %749 = vrot.lane.b32.xlu1 %v747_v1, %s1344_s22 }
 0x236   :  { %643 = vrot.lane.b32.xlu0 %v641_v37, %s1347_s29 }
 0x238   :  { %v649_v38 = vpop.permute.xlu1 %648 }
 0x239   :  { %v651_v31 = vmul.f32 %v649_v38, %v1555_v32 }
 0x23b   :  { %653 = vrot.lane.b32.xlu0 %v651_v31, %s1348_s30 }
 0x23d   :  { %v755_v41 = vpop.permute.xlu1 %754 }
 0x23e   :  { %v757_v42 = vmul.f32 %v755_v41, %v1555_v32 }
 0x23f   :  { %663 = vrot.lane.b32.xlu0 %v661_v40, %s1349_s9 }
 0x240   :  { %759 = vrot.lane.b32.xlu1 %v757_v42, %s1343_s21 }
 0x242   :  { %v765_v43 = vpop.permute.xlu1 %764 }
 0x243   :  { %v767_v44 = vmul.f32 %v765_v43, %v1555_v32 }
 0x245   :  { %769 = vrot.lane.b32.xlu1 %v767_v44, %s1346_s24 }
 0x247   :  { %v775_v47 = vpop.permute.xlu1 %774 }
 0x248   :  { %v777_v48 = vmul.f32 %v775_v47, %v1555_v32 }
 0x249   :  { %789 = vrot.lane.b32.xlu1 %v787_v46, %s1347_s29 }
 0x24a   :  { %779 = vrot.lane.b32.xlu0 %v777_v48, %s1345_s23 }
 0x24c   :  { %v795_v49 = vpop.permute.xlu1 %794 }
 0x24d   :  { %v797_v50 = vmul.f32 %v795_v49, %v1555_v32 }
 0x24f   :  { %799 = vrot.lane.b32.xlu0 %v797_v50, %s1348_s30 }
 0x251   :  { %v805_v51 = vpop.permute.xlu1 %804 }
 0x252   :  { %v807_v52 = vmul.f32 %v805_v51, %v1555_v32 }
 0x254   :  { %809 = vrot.lane.b32.xlu1 %v807_v52, %s1349_s9  ;;  %v1260_v52 = vld [vmem:[%s1731_s5 + $0x18] sm:$0xff]  }
 0x256   :  { %v293_v53 = vpop.permute.xlu1 %292 }
 0x257   :  { %v295_v37 = vmul.f32 %v293_v53, %v1555_v32 }
 0x25b   :  { %v584_v54 = vpop.permute.xlu1 %583 }
 0x25f   :  { %v392_v56 = vpop.permute.xlu1 %391 }
 0x260   :  { %v394_v59 = vadd.f32 %v392_v56, %v384_v58  ;;  %v586_v58 = vmul.f32 %v584_v54, %v1555_v32 }
 0x262   :  { %v402_v60 = vpop.permute.xlu0 %401 }
 0x263   :  { %v412_v61 = vpop.permute.xlu1 %411  ;;  %v404_v62 = vadd.f32 %v402_v60, %v394_v59  ;;  %v685_v59 = vsel %vm483_vm7, %v1261_v55, 0 }
 0x265   :  { %v414_v63 = vadd.f32 %v412_v61, %v404_v62 }
 0x267   :  { %v432_v0 = vpop.permute.xlu1 %431  ;;  %v422_v2 = vpop.permute.xlu0 %421 }
 0x268   :  { %v424_v11 = vadd.f32 %v422_v2, %v414_v63 }
 0x26a   :  { %v434_v15 = vadd.f32 %v432_v0, %v424_v11 }
 0x26c   :  { %v303_v24 = vpop.permute.xlu0 %302 }
 0x26d   :  { %v305_v38 = vadd.f32 %v303_v24, %v295_v37 }
 0x271   :  { %v313_v29 = vpop.permute.xlu0 %312 }
 0x272   :  { %v315_v39 = vadd.f32 %v313_v29, %v305_v38 }
 0x275   :  { %v323_v1 = vpop.permute.xlu0 %322 }
 0x276   :  { %v442_v13 = vpop.permute.xlu1 %441  ;;  %v325_v41 = vadd.f32 %v323_v1, %v315_v39 }
 0x277   :  { %v444_v26 = vadd.f32 %v442_v13, %v434_v15 }
 0x27b   :  { %v452_v25 = vpop.permute.xlu1 %451 }
 0x27c   :  { %v454_v27 = vadd.f32 %v452_v25, %v444_v26 }
 0x27f   :  { %v462_v28 = vpop.permute.xlu1 %461 }
 0x280   :  { %v464_v30 = vadd.f32 %v462_v28, %v454_v27  ;;  %v333_v31 = vpop.permute.xlu0 %332 }
 0x281   :  { %v335_v42 = vadd.f32 %v333_v31, %v325_v41 }
 0x282   :  { %v465_v34 = vpack.c.bf16 %v464_v30, %v464_v30  ;;  %v732_v30 = vmul.f32 %v1630_v57, %v1555_v32  ;;  %v831_v32 = vsel %vm483_vm7, %v1263_v35, 0 }
 0x284   :  { %1117 = vmatmul.mubr.msk.bf16.vlgmr.msra.gmra.mrb[4].mxu1 %vm479_vm8, %v465_v34  ;;  %v353_v43 = vpop.permute.xlu0 %352 }
 0x285   :  { %1121 = vmatpush3.bf16.msra.mxu1 %v1258_v33  ;;  %1124 = vmatprep.mubr.msk.bf16.mxu1 %vm1305_vm0, %v1304_v4  ;;  %v343_v40 = vpop.permute.xlu1 %342  ;;  %v1262_v33 = vld [vmem:[%s1731_s5 + $0x24] sm:$0xff]  }
 0x286   :  { %1122 = vmatprep.subr.bf16.mxu1 %v1304_v4  ;;  %v345_v44 = vadd.f32 %v343_v40, %v335_v42 }
 0x288   :  { %v355_v47 = vadd.f32 %v353_v43, %v345_v44 }
 0x289   :  { %1123 = vmatpush3.bf16.msra.mxu1 %v540_v36 }
 0x28a   :  { %1128 = vmatprep.subr.bf16.mxu1 %v1304_v4  ;;  %v594_v45 = vpop.permute.xlu1 %593 }
 0x28b   :  { %v596_v60 = vadd.f32 %v594_v45, %v586_v58 }
 0x28f   :  { %v604_v48 = vpop.permute.xlu1 %603 }
 0x290   :  { %v606_v62 = vadd.f32 %v604_v48, %v596_v60  ;;  %v907_v48 = vsel %vm896_vm9, %v1441_v9, 0 }
 0x293   :  { %v614_v56 = vpop.permute.xlu1 %613 }
 0x294   :  { %v363_v46 = vpop.permute.xlu0 %362  ;;  %v616_v0 = vadd.f32 %v614_v56, %v606_v62 }
 0x295   :  { %v365_v49 = vadd.f32 %v363_v46, %v355_v47  ;;  %v904_v47 = vsel %vm896_vm9, %v1427_v7, 0  ;;  %v919_v7 = vsel %vm896_vm9, %v1492_v20, 0 }
 0x299   :  { %v373_v50 = vpop.permute.xlu0 %372 }
 0x29a   :  { %v375_v51 = vadd.f32 %v373_v50, %v365_v49 }
 0x29c   :  { %v376_v53 = vpack.c.bf16 %v375_v51, %v375_v51 }
 0x29d   :  { %v634_v63 = vpop.permute.xlu0 %633 }
 0x29e   :  { %1125 = vmatmul.mubr.msk.bf16.vlgmr.msra.gmra.mrb[8].mxu1 %vm479_vm8, %v376_v53  ;;  %v624_v61 = vpop.permute.xlu1 %623 }
 0x29f   :  { %1129 = vmatpush3.bf16.msra.mxu1 %v1260_v52  ;;  %1132 = vmatprep.mubr.msk.bf16.mxu1 %vm1305_vm0, %v1304_v4  ;;  %v626_v2 = vadd.f32 %v624_v61, %v616_v0 }
 0x2a0   :  { %1130 = vmatprep.subr.bf16.mxu1 %v1304_v4 }
 0x2a1   :  { %v636_v15 = vadd.f32 %v634_v63, %v626_v2  ;;  %v887_v63 = vshrl.u32 %v44_v23, 7  ;;  %v884_v2 = vld [vmem:[%s1733_s7] sm:$0x3] }
 0x2a3   :  { %1131 = vmatpush3.bf16.msra.mxu1 %v685_v59  ;;  %v740_v11 = vpop.permute.xlu1 %739  ;;  %v888_v0 = vsub.s32 0, %v887_v63 }
 0x2a4   :  { %1136 = vmatprep.subr.bf16.mxu1 %v1304_v4  ;;  %v742_v1 = vadd.f32 %v740_v11, %v732_v30  ;;  %v892_v11 = vsub.s32 1, %v887_v63 }
 0x2a7   :  { %v750_v25 = vpop.permute.xlu1 %749 }
 0x2a8   :  { %v644_v13 = vpop.permute.xlu0 %643  ;;  %v752_v36 = vadd.f32 %v750_v25, %v742_v1 }
 0x2a9   :  { %v646_v26 = vadd.f32 %v644_v13, %v636_v15  ;;  %v889_v13 = vrot.slane %v884_v2, %v888_v0  ;;  %v893_v15 = vrot.slane %v884_v2, %v892_v11 }
 0x2ad   :  { %v654_v24 = vpop.permute.xlu0 %653 }
 0x2ae   :  { %v656_v54 = vadd.f32 %v654_v24, %v646_v26 }
 0x2b1   :  { %v664_v27 = vpop.permute.xlu0 %663 }
 0x2b2   :  { %v666_v28 = vadd.f32 %v664_v27, %v656_v54  ;;  %v760_v29 = vpop.permute.xlu1 %759 }
 0x2b3   :  { %v762_v57 = vadd.f32 %v760_v29, %v752_v36 }
 0x2b4   :  { %v667_v34 = vpack.c.bf16 %v666_v28, %v666_v28 }
 0x2b6   :  { %1133 = vmatmul.mubr.msk.bf16.vlgmr.msra.gmra.mrb[12].mxu1 %vm479_vm8, %v667_v34 }
 0x2b7   :  { %1137 = vmatpush3.bf16.msra.mxu1 %v1262_v33  ;;  %1140 = vmatprep.mubr.msk.bf16.mxu1 %vm1305_vm0, %v1304_v4  ;;  %v770_v37 = vpop.permute.xlu1 %769 }
 0x2b8   :  { %1138 = vmatprep.subr.bf16.mxu1 %v1304_v4  ;;  %v772_v38 = vadd.f32 %v770_v37, %v762_v57  ;;  %v901_v4 = vsel %vm896_vm9, %v1415_v5, 0  ;;  %v913_v5 = vsel %vm896_vm9, %v1468_v16, 0 }
 0x2b9   :  { %1089 = vmatpush3.bf16.xpose.msra.mxu0 %v901_v4 }
 0x2ba   :  { %1145 = vmatprep.subr.msk.bf16.mxu0 %vm896_vm9, %v1421_v6  ;;  %v916_v6 = vsel %vm896_vm9, %v1479_v18, 0 }
 0x2bb   :  { %1139 = vmatpush3.bf16.msra.mxu1 %v831_v32  ;;  %v790_v40 = vpop.permute.xlu1 %789 }
 0x2bc   :  { %v780_v31 = vpop.permute.xlu0 %779 }
 0x2bd   :  { %v782_v39 = vadd.f32 %v780_v31, %v772_v38 }
 0x2bf   :  { %v792_v41 = vadd.f32 %v790_v40, %v782_v39 }
 0x2c1   :  { %v800_v42 = vpop.permute.xlu0 %799  ;;  %1091 = vmatpush3.bf16.xpose.msra.mxu0 %v904_v47 }
 0x2c2   :  { %v802_v43 = vadd.f32 %v800_v42, %v792_v41  ;;  %1146 = vmatprep.subr.msk.bf16.mxu0 %vm896_vm9, %v1433_v8  ;;  %v922_v8 = vsel %vm896_vm9, %v1504_v22, 0 }
 0x2c6   :  { %v810_v44 = vpop.permute.xlu1 %809 }
 0x2c7   :  { %v812_v45 = vadd.f32 %v810_v44, %v802_v43 }
 0x2c9   :  { %v813_v46 = vpack.c.bf16 %v812_v45, %v812_v45  ;;  %1093 = vmatpush3.bf16.xpose.msra.mxu0 %v907_v48 }
 0x2ca   :  { %1147 = vmatprep.subr.msk.bf16.mxu0 %vm896_vm9, %v1447_v10 }
 0x2cb   :  { %1141 = vmatmul.mubr.msk.bf16.vlgmr.msra.gmra.mrb[16].mxu1 %vm479_vm8, %v813_v46 }
 0x2d1   :  { %1095 = vmatpush3.bf16.xpose.msra.mxu0 %v910_v3 }
 0x2d2   :  { %1148 = vmatprep.subr.msk.bf16.mxu0 %vm896_vm9, %v1459_v14 }
 0x2d9   :  { %1097 = vmatpush3.bf16.xpose.msra.mxu0 %v913_v5 }
 0x2da   :  { %1149 = vmatprep.subr.msk.bf16.mxu0 %vm896_vm9, %v1474_v17 }
 0x2e1   :  { %1099 = vmatpush3.bf16.xpose.msra.mxu0 %v916_v6 }
 0x2e2   :  { %1150 = vmatprep.subr.msk.bf16.mxu0 %vm896_vm9, %v1484_v19 }
 0x2e9   :  { %1101 = vmatpush3.bf16.xpose.msra.mxu0 %v919_v7 }
 0x2ea   :  { %1151 = vmatprep.subr.msk.bf16.mxu0 %vm896_vm9, %v1498_v21  ;;  %v1050_v21 = vld [vmem:[%s1732_s6] ss:$0 sm:$0xff]  ;;  %s1350_s6 = smov [#allocation5]  }
 0x2eb   :  { %s997_s20 = sshll.u32 %s1350_s6, 4  ;;  %s998_s20 = int_to_ptr.vmem [resolvable:$true] %s997_s20 }
 0x2ec   :  { %s1276_s21 = scalar_lea.vmem %s998_s20, 256  ;;  %p1281_p6 = scmp.lt.s32.totalorder %s998_s20, %s998_s20 }
 0x2ed   :  { %p1277_p5 = scmp.ne.s32.totalorder %s998_s20, %s1276_s21  ;;  %p1282_p7 = scmp.lt.s32.totalorder %s1276_s21, %s1276_s21 }
 0x2ef   :  { %p1283_p8 = por %p1282_p7, %p1281_p6 }
 0x2f1   :  { %1103 = vmatpush3.bf16.xpose.msra.mxu0 %v922_v8  ;;  %p1284_p9 = pnand %p1283_p8, %p1277_p5 }
 0x357   :  { %v521_v9 = vpop.f32.mrb[4].mxu1 }
 0x358   :  { %v1118_v10 = vpop.f32.mrb[5].mxu1 }
 0x359   :  { %v524_v12 = vpop.f32.mrb[6].mxu1 }
 0x35a   :  { %v1119_v14 = vpop.f32.mrb[7].mxu1 }
 0x371   :  { %v576_v16 = vpop.f32.mrb[8].mxu1 }
 0x372   :  { %v577_v17 = vadd.f32 %v576_v16, %v521_v9  ;;  %v1126_v18 = vpop.f32.mrb[9].mxu1 }
 0x373   :  { %v579_v49 = vpop.f32.mrb[10].mxu1 }
 0x374   :  { %v1127_v19 = vpop.f32.mrb[11].mxu1 }
 0x389   :  { %v721_v50 = vpop.f32.mrb[12].mxu1 }
 0x38a   :  { %v727_v51 = vadd.f32 %v721_v50, %v577_v17  ;;  %v1134_v20 = vpop.f32.mrb[13].mxu1 }
 0x38b   :  { %v724_v52 = vpop.f32.mrb[14].mxu1 }
 0x38c   :  { %v1135_v53 = vpop.f32.mrb[15].mxu1 }
 0x39e   :  { %v867_v55 = vpop.f32.mrb[16].mxu1 }
 0x39f   :  { %v873_v22 = vadd.f32 %v867_v55, %v727_v51  ;;  %v1142_v56 = vpop.f32.mrb[17].mxu1 }
 0x3a0   :  { %v870_v58 = vpop.f32.mrb[18].mxu1 }
 0x3a1   :  { %v881_v59 = vadd.f32 %v1050_v21, %v873_v22  ;;  %v1143_v60 = vpop.f32.mrb[19].mxu1 }
 0x3a3   :  { %v882_v61 = vmax.f32 %v881_v59, 0.0 }
 0x3a5   :  { %v883_v62 = vpack.c.bf16 %v882_v61, %v882_v61 }
 0x3a7   :  { %1104 = vmatprep.mubr.msk.bf16.mxu0 %vm896_vm9, %v883_v62 }
 0x3a8   :  { %1105 = vmatmul.mubr.msk.bf16.vlgmr.msra.gmra.mrb[4].mxu0 %vm896_vm9, %v883_v62 }
 0x47b   :  { %v982_v24 = vpop.f32.mrb[4].mxu0 }
 0x47c   :  { %v983_v25 = vadd.f32 %v982_v24, %v889_v13  ;;  %v984_v26 = vpop.f32.mrb[5].mxu0 }
 0x47d   :  { %v985_v54 = vadd.f32 %v984_v26, %v893_v15  ;;  %v986_v27 = vpop.f32.mrb[6].mxu0 }
 0x47e   :  { %989 = vst [vmem:[#allocation5] sm:$0xff] %v983_v25  ;;  %v987_v28 = vpop.f32.mrb[7].mxu0 }
 0x47f   :  { %990 = vst [vmem:[#allocation5 + $0x8] sm:$0xff] %v985_v54 }
 0x480   :  { %1287 = shalt.err (!%p1284_p9)
}
 0x481   :  { %s1288_s23 = scalar_lea.hbm %s1734_s8, 256 }
 0x482   :  { %p1289_p10 = scmp.ne.s32.totalorder %s1734_s8, %s1288_s23  ;;  %p1292_p11 = scmp.lt.u32.totalorder %s1288_s23, %s1734_s8 }
 0x484   :  { %p1294_p12 = pnand %p1292_p11, %p1289_p10 }
 0x486   :  { %1297 = shalt.err (!%p1294_p12)
}
 0x487   :  { %1000 = dma.vmem_to_hbm [thread:$0]  %s998_s20, 256, %s1734_s8, [#allocation3]  }
 0x488   :  { %1300 = dma.done.wait [#allocation3], 256  }
 0x489   :  { %1301 = vsyncadd [#allocation3], 4294967040 }
 0x48a   :  { %1004 = vsyncpa [#allocation3], 1 }
 0x48b   :  { %1005 = vsyncpa [#allocation4], 1 }

</bundles_post_ra>
